<compile_context>
chip_gen: v5e
topology: v5e:2x2
jax: 0.10.0
libtpu: 0.0.40
codegen_flags: <defaults>
</compile_context>

<pallas_src>
import math

import jax
import jax.numpy as jnp
from jax.experimental import pallas as pl
from jax.experimental.pallas import tpu as pltpu

NEG_INF = -1e30  # large finite negative: safe under exp() even for fully-masked rows


# ---------------------------------------------------------------------------
# Kernel 1/3: fused linear (x @ W_t + b), bf16 operands, f32 accumulation.
# ---------------------------------------------------------------------------
def _linear_bias_kernel(x_ref, w_ref, b_ref, o_ref):
    acc = jnp.dot(x_ref[...], w_ref[...], preferred_element_type=jnp.float32)
    o_ref[...] = (acc + b_ref[...]).astype(o_ref.dtype)


def _linear(x2d, w_t, b, out_dtype, tm):
    """x2d: (M, K) bf16, w_t: (K, N) bf16 (already transposed), b: (1, N) f32."""
    M, K = x2d.shape
    _, N = w_t.shape
    assert M % tm == 0
    return pl.pallas_call(
        _linear_bias_kernel,
        out_shape=jax.ShapeDtypeStruct((M, N), out_dtype),
        grid=(M // tm,),
        in_specs=[
            pl.BlockSpec((tm, K), lambda i: (i, 0)),
            # constant weights/bias: whole-array resident in VMEM (single copy,
            # not pipelined/double-buffered across grid steps)
            pl.BlockSpec(memory_space=pltpu.MemorySpace.VMEM),
            pl.BlockSpec(memory_space=pltpu.MemorySpace.VMEM),
        ],
        out_specs=pl.BlockSpec((tm, N), lambda i: (i, 0)),
        compiler_params=pltpu.CompilerParams(
            dimension_semantics=("parallel",),
            vmem_limit_bytes=48 * 1024 * 1024,
        ),
    )(x2d, w_t, b)


# ---------------------------------------------------------------------------
# Kernel 2: flash-style causal attention over grid (B*H, q-tiles, kv-tiles).
# ---------------------------------------------------------------------------
def _flash_attn_kernel(q_ref, k_ref, v_ref, o_ref, m_ref, l_ref, acc_ref):
    qi = pl.program_id(1)
    ki = pl.program_id(2)
    tq = q_ref.shape[0]
    tk = k_ref.shape[0]

    @pl.when(ki == 0)
    def _init():
        m_ref[...] = jnp.full(m_ref.shape, NEG_INF, m_ref.dtype)
        l_ref[...] = jnp.zeros(l_ref.shape, l_ref.dtype)
        acc_ref[...] = jnp.zeros(acc_ref.shape, acc_ref.dtype)

    # Causal block skipping: kv blocks strictly above the diagonal contribute nothing.
    @pl.when(ki <= qi)
    def _compute():
        q = q_ref[...]                      # (tq, hd) bf16, pre-scaled by 1/sqrt(hd)
        k = k_ref[...]                      # (tk, hd) bf16
        # q @ k^T on the MXU without materializing a transpose: contract last dims.
        s = jax.lax.dot_general(
            q, k, (((1,), (1,)), ((), ())),
            preferred_element_type=jnp.float32)                     # (tq, tk) f32

        # Only the diagonal block (ki == qi) actually needs masking; for ki < qi the
        # predicate is all-true and the select is a cheap VPU no-op.
        row = qi * tq + jax.lax.broadcasted_iota(jnp.int32, (tq, tk), 0)
        col = ki * tk + jax.lax.broadcasted_iota(jnp.int32, (tq, tk), 1)
        s = jnp.where(col <= row, s, NEG_INF)

        # Online softmax update (f32 statistics / accumulator).
        m_prev = m_ref[...]
        m_new = jnp.maximum(m_prev, jnp.max(s, axis=-1, keepdims=True))
        alpha = jnp.exp(m_prev - m_new)
        p = jnp.exp(s - m_new)
        l_ref[...] = alpha * l_ref[...] + jnp.sum(p, axis=-1, keepdims=True)
        acc_ref[...] = alpha * acc_ref[...] + jnp.dot(
            p.astype(v_ref.dtype), v_ref[...], preferred_element_type=jnp.float32)
        m_ref[...] = m_new

    @pl.when(ki == pl.num_programs(2) - 1)
    def _finalize():
        inv_l = pl.reciprocal(l_ref[...], approx=True)   # EUP slot, frees the VALU
        o_ref[...] = (acc_ref[...] * inv_l).astype(o_ref.dtype)


def _flash_attention(q, k, v, *, tq, tk):
    """q, k, v: (B*H, T, hd) bf16; q already scaled by 1/sqrt(hd)."""
    BH, T, hd = q.shape
    assert T % tq == 0 and T % tk == 0
    return pl.pallas_call(
        _flash_attn_kernel,
        out_shape=jax.ShapeDtypeStruct((BH, T, hd), q.dtype),
        grid=(BH, T // tq, T // tk),
        in_specs=[
            pl.BlockSpec((None, tq, hd), lambda b, qi, ki: (b, qi, 0)),
            pl.BlockSpec((None, tk, hd), lambda b, qi, ki: (b, ki, 0)),
            pl.BlockSpec((None, tk, hd), lambda b, qi, ki: (b, ki, 0)),
        ],
        out_specs=pl.BlockSpec((None, tq, hd), lambda b, qi, ki: (b, qi, 0)),
        scratch_shapes=[
            pltpu.VMEM((tq, 1), jnp.float32),    # running max m
            pltpu.VMEM((tq, 1), jnp.float32),    # running denom l
            pltpu.VMEM((tq, hd), jnp.float32),   # output accumulator
        ],
        compiler_params=pltpu.CompilerParams(
            dimension_semantics=("parallel", "parallel", "arbitrary"),
            vmem_limit_bytes=48 * 1024 * 1024,
        ),
    )(q, k, v)


# ---------------------------------------------------------------------------
# Full forward pass.
# ---------------------------------------------------------------------------
def causal_self_attention(x, params, n_head):
    """x: (B, T, C) f32; params: nn.Linear-style (C,C) weights and (1,C) biases."""
    B, T, C = x.shape
    hd = C // n_head
    scale = 1.0 / math.sqrt(hd)

    # Parameter prep (one-time, outside the kernels): pre-transpose to (in, out) so
    # kernels never transpose on-chip, fuse q/k/v into one (C, 3C) weight, fold the
    # 1/sqrt(hd) score scale into the query projection, cast weights to bf16.
    wqkv = jnp.concatenate(
        [params["wq"].T * scale, params["wk"].T, params["wv"].T], axis=1
    ).astype(jnp.bfloat16)                                           # (C, 3C)
    bqkv = jnp.concatenate(
        [params["bq"] * scale, params["bk"], params["bv"]], axis=1
    ).astype(jnp.float32)                                            # (1, 3C)
    wp_t = params["wp"].T.astype(jnp.bfloat16)                       # (C, C)
    bp = params["bp"].astype(jnp.float32)                            # (1, C)

    # ---- fused QKV projection on flattened rows (B*T, C) ----
    M = B * T
    tm = M if M <= 256 else 256
    x2d = x.reshape(M, C).astype(jnp.bfloat16)
    qkv = _linear(x2d, wqkv, bqkv, jnp.bfloat16, tm)                 # (B*T, 3C)

    # Split heads (layout plumbing in XLA): (B*T, C) -> (B*H, T, hd).
    def split_heads(t):
        return (t.reshape(B, T, n_head, hd)
                 .transpose(0, 2, 1, 3)
                 .reshape(B * n_head, T, hd))

    q = split_heads(qkv[:, :C])
    k = split_heads(qkv[:, C:2 * C])
    v = split_heads(qkv[:, 2 * C:])

    # ---- flash-style causal attention ----
    tq = T if T <= 128 else 128
    y = _flash_attention(q, k, v, tq=tq, tk=tq)                      # (B*H, T, hd) bf16

    # Merge heads back: (B*H, T, hd) -> (B*T, C).
    y2d = (y.reshape(B, n_head, T, hd)
             .transpose(0, 2, 1, 3)
             .reshape(M, C))

    # ---- output projection ----
    out = _linear(y2d, wp_t, bp, x.dtype, tm)                        # (B*T, C) f32
    return out.reshape(B, T, C)


# ---------------------------------------------------------------------------
# Pure-JAX f32 reference mirroring the PyTorch forward (dropout in eval mode).
# ---------------------------------------------------------------------------
def _reference(x, params, n_head):
    B, T, C = x.shape
    hd = C // n_head

    def lin(t, w, b):
        return t @ w.T + b

    q = lin(x, params["wq"], params["bq"]).reshape(B, T, n_head, hd).transpose(0, 2, 1, 3)
    k = lin(x, params["wk"], params["bk"]).reshape(B, T, n_head, hd).transpose(0, 2, 1, 3)
    v = lin(x, params["wv"], params["bv"]).reshape(B, T, n_head, hd).transpose(0, 2, 1, 3)
    att = jnp.einsum("bhqd,bhkd->bhqk", q, k) * (1.0 / math.sqrt(hd))
    mask = jnp.tril(jnp.ones((T, T), dtype=bool))
    att = jnp.where(mask[None, None], att, -jnp.inf)
    att = jax.nn.softmax(att, axis=-1)
    y = jnp.einsum("bhqk,bhkd->bhqd", att, v).transpose(0, 2, 1, 3).reshape(B, T, C)
    return lin(y, params["wp"], params["bp"])


if __name__ == "__main__":
    # Small minGPT-style config: n_embd=128, n_head=4, block_size >= T=16.
    # C=128 keeps every tile lane-dense (multiple of 128 lanes).
    B, T, C, n_head = 2, 16, 128, 4

    key = jax.random.PRNGKey(0)
    keys = jax.random.split(key, 9)
    bound = 1.0 / math.sqrt(C)   # PyTorch nn.Linear default uniform init range

    params = {
        "wq": jax.random.uniform(keys[0], (C, C), jnp.float32, -bound, bound),
        "bq": jax.random.uniform(keys[1], (1, C), jnp.float32, -bound, bound),
        "wk": jax.random.uniform(keys[2], (C, C), jnp.float32, -bound, bound),
        "bk": jax.random.uniform(keys[3], (1, C), jnp.float32, -bound, bound),
        "wv": jax.random.uniform(keys[4], (C, C), jnp.float32, -bound, bound),
        "bv": jax.random.uniform(keys[5], (1, C), jnp.float32, -bound, bound),
        "wp": jax.random.uniform(keys[6], (C, C), jnp.float32, -bound, bound),
        "bp": jax.random.uniform(keys[7], (1, C), jnp.float32, -bound, bound),
    }
    x = jax.random.normal(keys[8], (B, T, C), jnp.float32)

    attn_fn = jax.jit(causal_self_attention, static_argnames=("n_head",))
    out = jax.block_until_ready(attn_fn(x, params, n_head=n_head))

    ref = _reference(x, params, n_head)
    assert out.shape == (B, T, C)
    max_err = float(jnp.max(jnp.abs(out - ref)))
    # bf16 matmul operands (f32 accumulation / f32 softmax stats) vs f32 reference.
    assert jnp.allclose(out, ref, atol=2e-2, rtol=2e-2), (
        f"mismatch vs reference, max abs err {max_err}")

    print("KERNEL_OK")
</pallas_src>

<mosaic_0001>
module attributes {stable_mosaic.version = 11 : i64} {
  func.func @_linear_bias_kernel(%arg0: i32, %arg1: memref<32x128xbf16, #tpu.memory_space<vmem>>, %arg2: memref<128x384xbf16, #tpu.memory_space<vmem>>, %arg3: memref<1x384xf32, #tpu.memory_space<vmem>>, %arg4: memref<32x384xbf16, #tpu.memory_space<vmem>>) attributes {dimension_semantics = [#tpu.dimension_semantics<parallel>], iteration_bounds = array<i64: 1>, scalar_prefetch = 0 : i64, scratch_operands = 0 : i64, tpu.core_type = #tpu.core_type<tc>, window_params = [{transform_indices = @transform_0, window_bounds = array<i64: 32, 128>}, {pipeline_mode = #tpu.pipeline_mode<synchronous>, transform_indices = @transform_1, window_bounds = array<i64: 128, 384>}, {pipeline_mode = #tpu.pipeline_mode<synchronous>, transform_indices = @transform_2, window_bounds = array<i64: 1, 384>}, {transform_indices = @transform_3, window_bounds = array<i64: 32, 384>}]} {
    %c0 = arith.constant 0 : index
    %c0_0 = arith.constant 0 : index
    %0 = vector.load %arg1[%c0, %c0_0] : memref<32x128xbf16, #tpu.memory_space<vmem>>, vector<32x128xbf16>
    %c0_1 = arith.constant 0 : index
    %c0_2 = arith.constant 0 : index
    %1 = vector.load %arg2[%c0_1, %c0_2] : memref<128x384xbf16, #tpu.memory_space<vmem>>, vector<128x384xbf16>
    %cst = arith.constant dense<0.000000e+00> : vector<32x384xf32>
    %2 = tpu.matmul %0, %1, %cst {dimension_numbers = #tpu.dot_dimension_numbers<[1], [0], [0], [1], [0, 0, 1, 1], [], []>} : vector<32x128xbf16>, vector<128x384xbf16>, vector<32x384xf32> -> vector<32x384xf32>
    %c0_3 = arith.constant 0 : index
    %c0_4 = arith.constant 0 : index
    %3 = vector.load %arg3[%c0_3, %c0_4] : memref<1x384xf32, #tpu.memory_space<vmem>>, vector<1x384xf32>
    %4 = vector.broadcast %3 : vector<1x384xf32> to vector<32x384xf32>
    %5 = arith.addf %2, %4 : vector<32x384xf32>
    %6 = arith.truncf %5 : vector<32x384xf32> to vector<32x384xbf16>
    %c0_5 = arith.constant 0 : index
    %c0_6 = arith.constant 0 : index
    %7 = vector.load %arg4[%c0_5, %c0_6] : memref<32x384xbf16, #tpu.memory_space<vmem>>, vector<32x384xbf16>
    tpu.vector_store %arg4[%c0_5, %c0_6], %6 {strides = array<i32>} : memref<32x384xbf16, #tpu.memory_space<vmem>>, vector<32x384xbf16>,
    return
  }
  func.func @transform_0(%arg0: i32) -> (i32, i32) {
    %c0_i32 = arith.constant 0 : i32
    %c0_i32_0 = arith.constant 0 : i32
    return %arg0, %c0_i32 : i32, i32
  }
  func.func @transform_1(%arg0: i32) -> (i32, i32) {
    %c0_i32 = arith.constant 0 : i32
    %c0_i32_0 = arith.constant 0 : i32
    %c0_i32_1 = arith.constant 0 : i32
    return %c0_i32, %c0_i32_0 : i32, i32
  }
  func.func @transform_2(%arg0: i32) -> (i32, i32) {
    %c0_i32 = arith.constant 0 : i32
    %c0_i32_0 = arith.constant 0 : i32
    %c0_i32_1 = arith.constant 0 : i32
    return %c0_i32, %c0_i32_0 : i32, i32
  }
  func.func @transform_3(%arg0: i32) -> (i32, i32) {
    %c0_i32 = arith.constant 0 : i32
    %c0_i32_0 = arith.constant 0 : i32
    return %arg0, %c0_i32 : i32, i32
  }
}

module attributes {stable_mosaic.version = 11 : i64} {
  func.func @_flash_attn_kernel(%arg0: i32, %arg1: i32, %arg2: i32, %arg3: memref<1x16x32xbf16, #tpu.memory_space<vmem>>, %arg4: memref<1x16x32xbf16, #tpu.memory_space<vmem>>, %arg5: memref<1x16x32xbf16, #tpu.memory_space<vmem>>, %arg6: memref<1x16x32xbf16, #tpu.memory_space<vmem>>, %arg7: memref<16x1xf32, #tpu.memory_space<vmem>>, %arg8: memref<16x1xf32, #tpu.memory_space<vmem>>, %arg9: memref<16x32xf32, #tpu.memory_space<vmem>>) attributes {dimension_semantics = [#tpu.dimension_semantics<parallel>, #tpu.dimension_semantics<parallel>, #tpu.dimension_semantics<arbitrary>], iteration_bounds = array<i64: 8, 1, 1>, scalar_prefetch = 0 : i64, scratch_operands = 3 : i64, tpu.core_type = #tpu.core_type<tc>, window_params = [{transform_indices = @transform_0, window_bounds = array<i64: 1, 16, 32>}, {transform_indices = @transform_1, window_bounds = array<i64: 1, 16, 32>}, {transform_indices = @transform_2, window_bounds = array<i64: 1, 16, 32>}, {transform_indices = @transform_3, window_bounds = array<i64: 1, 16, 32>}]} {
    %c0_i32 = arith.constant 0 : i32
    %0 = arith.cmpi eq, %arg2, %c0_i32 : i32
    %1 = arith.extui %0 : i1 to i32
    %c0_i32_0 = arith.constant 0 : i32
    %2 = arith.cmpi ne, %1, %c0_i32_0 : i32
    scf.if %2 {
      %cst = arith.constant -1.000000e+30 : f32
      %9 = vector.broadcast %cst : f32 to vector<16x1xf32>
      %c0 = arith.constant 0 : index
      %c0_4 = arith.constant 0 : index
      %10 = vector.load %arg7[%c0, %c0_4] : memref<16x1xf32, #tpu.memory_space<vmem>>, vector<16x1xf32>
      tpu.vector_store %arg7[%c0, %c0_4], %9 {strides = array<i32>} : memref<16x1xf32, #tpu.memory_space<vmem>>, vector<16x1xf32>,
      %cst_5 = arith.constant 0.000000e+00 : f32
      %11 = vector.broadcast %cst_5 : f32 to vector<16x1xf32>
      %c0_6 = arith.constant 0 : index
      %c0_7 = arith.constant 0 : index
      %12 = vector.load %arg8[%c0_6, %c0_7] : memref<16x1xf32, #tpu.memory_space<vmem>>, vector<16x1xf32>
      tpu.vector_store %arg8[%c0_6, %c0_7], %11 {strides = array<i32>} : memref<16x1xf32, #tpu.memory_space<vmem>>, vector<16x1xf32>,
      %cst_8 = arith.constant 0.000000e+00 : f32
      %13 = vector.broadcast %cst_8 : f32 to vector<16x32xf32>
      %c0_9 = arith.constant 0 : index
      %c0_10 = arith.constant 0 : index
      %14 = vector.load %arg9[%c0_9, %c0_10] : memref<16x32xf32, #tpu.memory_space<vmem>>, vector<16x32xf32>
      tpu.vector_store %arg9[%c0_9, %c0_10], %13 {strides = array<i32>} : memref<16x32xf32, #tpu.memory_space<vmem>>, vector<16x32xf32>,
    } else {
    }
    %3 = arith.cmpi sle, %arg2, %arg1 : i32
    %4 = arith.extui %3 : i1 to i32
    %c0_i32_1 = arith.constant 0 : i32
    %5 = arith.cmpi ne, %4, %c0_i32_1 : i32
    scf.if %5 {
      %c0 = arith.constant 0 : index
      %c0_4 = arith.constant 0 : index
      %c0_5 = arith.constant 0 : index
      %9 = vector.load %arg3[%c0, %c0_4, %c0_5] : memref<1x16x32xbf16, #tpu.memory_space<vmem>>, vector<1x16x32xbf16>
      %10 = vector.shape_cast %9 : vector<1x16x32xbf16> to vector<16x32xbf16>
      %c0_6 = arith.constant 0 : index
      %c0_7 = arith.constant 0 : index
      %c0_8 = arith.constant 0 : index
      %11 = vector.load %arg4[%c0_6, %c0_7, %c0_8] : memref<1x16x32xbf16, #tpu.memory_space<vmem>>, vector<1x16x32xbf16>
      %12 = vector.shape_cast %11 : vector<1x16x32xbf16> to vector<16x32xbf16>
      %cst = arith.constant dense<0.000000e+00> : vector<16x16xf32>
      %13 = tpu.matmul %10, %12, %cst {dimension_numbers = #tpu.dot_dimension_numbers<[1], [1], [0], [0], [0, 0, 1, 0], [], []>} : vector<16x32xbf16>, vector<16x32xbf16>, vector<16x16xf32> -> vector<16x16xf32>
      %c16_i32 = arith.constant 16 : i32
      %14 = arith.muli %arg1, %c16_i32 : i32
      %15 = tpu.iota {dimensions = array<i32: 0>} : vector<16x16xi32>
      %16 = vector.broadcast %14 : i32 to vector<16x16xi32>
      %17 = arith.addi %16, %15 : vector<16x16xi32>
      %c16_i32_9 = arith.constant 16 : i32
      %18 = arith.muli %arg2, %c16_i32_9 : i32
      %19 = tpu.iota {dimensions = array<i32: 1>} : vector<16x16xi32>
      %20 = vector.broadcast %18 : i32 to vector<16x16xi32>
      %21 = arith.addi %20, %19 : vector<16x16xi32>
      %22 = arith.cmpi sle, %21, %17 : vector<16x16xi32>
      %cst_10 = arith.constant -1.000000e+30 : f32
      %23 = vector.broadcast %cst_10 : f32 to vector<16x16xf32>
      %24 = arith.select %22, %13, %23 : vector<16x16xi1>, vector<16x16xf32>
      %c0_11 = arith.constant 0 : index
      %c0_12 = arith.constant 0 : index
      %25 = vector.load %arg7[%c0_11, %c0_12] : memref<16x1xf32, #tpu.memory_space<vmem>>, vector<16x1xf32>
      %cst_13 = arith.constant dense<0xFF800000> : vector<16xf32>
      %26 = vector.multi_reduction <maximumf>, %24, %cst_13 [1] : vector<16x16xf32> to vector<16xf32>
      %27 = vector.shape_cast %26 : vector<16xf32> to vector<16x1xf32>
      %28 = arith.maximumf %25, %27 : vector<16x1xf32>
      %29 = arith.subf %25, %28 : vector<16x1xf32>
      %30 = math.exp %29 : vector<16x1xf32>
      %31 = vector.broadcast %28 : vector<16x1xf32> to vector<16x16xf32>
      %32 = arith.subf %24, %31 : vector<16x16xf32>
      %33 = math.exp %32 : vector<16x16xf32>
      %c0_14 = arith.constant 0 : index
      %c0_15 = arith.constant 0 : index
      %34 = vector.load %arg8[%c0_14, %c0_15] : memref<16x1xf32, #tpu.memory_space<vmem>>, vector<16x1xf32>
      %35 = arith.mulf %30, %34 : vector<16x1xf32>
      %cst_16 = arith.constant dense<0.000000e+00> : vector<16xf32>
      %36 = vector.multi_reduction <add>, %33, %cst_16 [1] : vector<16x16xf32> to vector<16xf32>
      %37 = vector.shape_cast %36 : vector<16xf32> to vector<16x1xf32>
      %38 = arith.addf %35, %37 : vector<16x1xf32>
      %c0_17 = arith.constant 0 : index
      %c0_18 = arith.constant 0 : index
      %39 = vector.load %arg8[%c0_17, %c0_18] : memref<16x1xf32, #tpu.memory_space<vmem>>, vector<16x1xf32>
      tpu.vector_store %arg8[%c0_17, %c0_18], %38 {strides = array<i32>} : memref<16x1xf32, #tpu.memory_space<vmem>>, vector<16x1xf32>,
      %c0_19 = arith.constant 0 : index
      %c0_20 = arith.constant 0 : index
      %40 = vector.load %arg9[%c0_19, %c0_20] : memref<16x32xf32, #tpu.memory_space<vmem>>, vector<16x32xf32>
      %41 = vector.broadcast %30 : vector<16x1xf32> to vector<16x32xf32>
      %42 = arith.mulf %41, %40 : vector<16x32xf32>
      %43 = arith.truncf %33 : vector<16x16xf32> to vector<16x16xbf16>
      %c0_21 = arith.constant 0 : index
      %c0_22 = arith.constant 0 : index
      %c0_23 = arith.constant 0 : index
      %44 = vector.load %arg5[%c0_21, %c0_22, %c0_23] : memref<1x16x32xbf16, #tpu.memory_space<vmem>>, vector<1x16x32xbf16>
      %45 = vector.shape_cast %44 : vector<1x16x32xbf16> to vector<16x32xbf16>
      %cst_24 = arith.constant dense<0.000000e+00> : vector<16x32xf32>
      %46 = tpu.matmul %43, %45, %cst_24 {dimension_numbers = #tpu.dot_dimension_numbers<[1], [0], [0], [1], [0, 0, 1, 1], [], []>} : vector<16x16xbf16>, vector<16x32xbf16>, vector<16x32xf32> -> vector<16x32xf32>
      %47 = arith.addf %42, %46 : vector<16x32xf32>
      %c0_25 = arith.constant 0 : index
      %c0_26 = arith.constant 0 : index
      %48 = vector.load %arg9[%c0_25, %c0_26] : memref<16x32xf32, #tpu.memory_space<vmem>>, vector<16x32xf32>
      tpu.vector_store %arg9[%c0_25, %c0_26], %47 {strides = array<i32>} : memref<16x32xf32, #tpu.memory_space<vmem>>, vector<16x32xf32>,
      %c0_27 = arith.constant 0 : index
      %c0_28 = arith.constant 0 : index
      %49 = vector.load %arg7[%c0_27, %c0_28] : memref<16x1xf32, #tpu.memory_space<vmem>>, vector<16x1xf32>
      tpu.vector_store %arg7[%c0_27, %c0_28], %28 {strides = array<i32>} : memref<16x1xf32, #tpu.memory_space<vmem>>, vector<16x1xf32>,
    } else {
    }
    %c0_i32_2 = arith.constant 0 : i32
    %6 = arith.cmpi eq, %arg2, %c0_i32_2 : i32
    %7 = arith.extui %6 : i1 to i32
    %c0_i32_3 = arith.constant 0 : i32
    %8 = arith.cmpi ne, %7, %c0_i32_3 : i32
    scf.if %8 {
      %c0 = arith.constant 0 : index
      %c0_4 = arith.constant 0 : index
      %9 = vector.load %arg8[%c0, %c0_4] : memref<16x1xf32, #tpu.memory_space<vmem>>, vector<16x1xf32>
      %10 = tpu.reciprocal %9 {approx = true} : vector<16x1xf32> -> vector<16x1xf32>
      %c0_5 = arith.constant 0 : index
      %c0_6 = arith.constant 0 : index
      %11 = vector.load %arg9[%c0_5, %c0_6] : memref<16x32xf32, #tpu.memory_space<vmem>>, vector<16x32xf32>
      %12 = vector.broadcast %10 : vector<16x1xf32> to vector<16x32xf32>
      %13 = arith.mulf %11, %12 : vector<16x32xf32>
      %14 = arith.truncf %13 : vector<16x32xf32> to vector<16x32xbf16>
      %c0_7 = arith.constant 0 : index
      %c0_8 = arith.constant 0 : index
      %c0_9 = arith.constant 0 : index
      %15 = vector.load %arg6[%c0_7, %c0_8, %c0_9] : memref<1x16x32xbf16, #tpu.memory_space<vmem>>, vector<1x16x32xbf16>
      %16 = vector.shape_cast %15 : vector<1x16x32xbf16> to vector<16x32xbf16>
      %17 = vector.shape_cast %14 : vector<16x32xbf16> to vector<1x16x32xbf16>
      tpu.vector_store %arg6[%c0_7, %c0_8, %c0_9], %17 {strides = array<i32>} : memref<1x16x32xbf16, #tpu.memory_space<vmem>>, vector<1x16x32xbf16>,
    } else {
    }
    return
  }
  func.func @transform_0(%arg0: i32, %arg1: i32, %arg2: i32) -> (i32, i32, i32) {
    %c0_i32 = arith.constant 0 : i32
    %c0_i32_0 = arith.constant 0 : i32
    return %arg0, %arg1, %c0_i32 : i32, i32, i32
  }
  func.func @transform_1(%arg0: i32, %arg1: i32, %arg2: i32) -> (i32, i32, i32) {
    %c0_i32 = arith.constant 0 : i32
    %c0_i32_0 = arith.constant 0 : i32
    return %arg0, %arg2, %c0_i32 : i32, i32, i32
  }
  func.func @transform_2(%arg0: i32, %arg1: i32, %arg2: i32) -> (i32, i32, i32) {
    %c0_i32 = arith.constant 0 : i32
    %c0_i32_0 = arith.constant 0 : i32
    return %arg0, %arg2, %c0_i32 : i32, i32, i32
  }
  func.func @transform_3(%arg0: i32, %arg1: i32, %arg2: i32) -> (i32, i32, i32) {
    %c0_i32 = arith.constant 0 : i32
    %c0_i32_0 = arith.constant 0 : i32
    return %arg0, %arg1, %c0_i32 : i32, i32, i32
  }
}

module attributes {stable_mosaic.version = 11 : i64} {
  func.func @_linear_bias_kernel(%arg0: i32, %arg1: memref<32x128xbf16, #tpu.memory_space<vmem>>, %arg2: memref<128x128xbf16, #tpu.memory_space<vmem>>, %arg3: memref<1x128xf32, #tpu.memory_space<vmem>>, %arg4: memref<32x128xf32, #tpu.memory_space<vmem>>) attributes {dimension_semantics = [#tpu.dimension_semantics<parallel>], iteration_bounds = array<i64: 1>, scalar_prefetch = 0 : i64, scratch_operands = 0 : i64, tpu.core_type = #tpu.core_type<tc>, window_params = [{transform_indices = @transform_0, window_bounds = array<i64: 32, 128>}, {pipeline_mode = #tpu.pipeline_mode<synchronous>, transform_indices = @transform_1, window_bounds = array<i64: 128, 128>}, {pipeline_mode = #tpu.pipeline_mode<synchronous>, transform_indices = @transform_2, window_bounds = array<i64: 1, 128>}, {transform_indices = @transform_3, window_bounds = array<i64: 32, 128>}]} {
    %c0 = arith.constant 0 : index
    %c0_0 = arith.constant 0 : index
    %0 = vector.load %arg1[%c0, %c0_0] : memref<32x128xbf16, #tpu.memory_space<vmem>>, vector<32x128xbf16>
    %c0_1 = arith.constant 0 : index
    %c0_2 = arith.constant 0 : index
    %1 = vector.load %arg2[%c0_1, %c0_2] : memref<128x128xbf16, #tpu.memory_space<vmem>>, vector<128x128xbf16>
    %cst = arith.constant dense<0.000000e+00> : vector<32x128xf32>
    %2 = tpu.matmul %0, %1, %cst {dimension_numbers = #tpu.dot_dimension_numbers<[1], [0], [0], [1], [0, 0, 1, 1], [], []>} : vector<32x128xbf16>, vector<128x128xbf16>, vector<32x128xf32> -> vector<32x128xf32>
    %c0_3 = arith.constant 0 : index
    %c0_4 = arith.constant 0 : index
    %3 = vector.load %arg3[%c0_3, %c0_4] : memref<1x128xf32, #tpu.memory_space<vmem>>, vector<1x128xf32>
    %4 = vector.broadcast %3 : vector<1x128xf32> to vector<32x128xf32>
    %5 = arith.addf %2, %4 : vector<32x128xf32>
    %c0_5 = arith.constant 0 : index
    %c0_6 = arith.constant 0 : index
    %6 = vector.load %arg4[%c0_5, %c0_6] : memref<32x128xf32, #tpu.memory_space<vmem>>, vector<32x128xf32>
    tpu.vector_store %arg4[%c0_5, %c0_6], %5 {strides = array<i32>} : memref<32x128xf32, #tpu.memory_space<vmem>>, vector<32x128xf32>,
    return
  }
  func.func @transform_0(%arg0: i32) -> (i32, i32) {
    %c0_i32 = arith.constant 0 : i32
    %c0_i32_0 = arith.constant 0 : i32
    return %arg0, %c0_i32 : i32, i32
  }
  func.func @transform_1(%arg0: i32) -> (i32, i32) {
    %c0_i32 = arith.constant 0 : i32
    %c0_i32_0 = arith.constant 0 : i32
    %c0_i32_1 = arith.constant 0 : i32
    return %c0_i32, %c0_i32_0 : i32, i32
  }
  func.func @transform_2(%arg0: i32) -> (i32, i32) {
    %c0_i32 = arith.constant 0 : i32
    %c0_i32_0 = arith.constant 0 : i32
    %c0_i32_1 = arith.constant 0 : i32
    return %c0_i32, %c0_i32_0 : i32, i32
  }
  func.func @transform_3(%arg0: i32) -> (i32, i32) {
    %c0_i32 = arith.constant 0 : i32
    %c0_i32_0 = arith.constant 0 : i32
    return %arg0, %c0_i32 : i32, i32
  }
}

</mosaic_0001>

<bundles_post_ra>
// kernel: causal_self_attention.5
= control target key start
LH: loop header
LB: loop body
LE: loop exit
PB: predicated region body
PF: predicated region fallthrough
CT: control target
= control target key end

     0   :  { %s287_s0 = inlined_call_operand.vmem [shape: bf16[32,128], index: 0, kind: input, shape index: {}]   ;;  %s288_s1 = inlined_call_operand.vmem [shape: bf16[128,128], index: 1, kind: input, shape index: {}]   ;;  %s289_s2 = inlined_call_operand.vmem [shape: f32[1,128], index: 2, kind: input, shape index: {}]   ;;  %s290_s3 = inlined_call_operand.hbm [shape: f32[32,128], index: 3, kind: output, shape index: {}]  }
   0x1   :  { %v189_v0 = vld [vmem:[%s288_s1 + $0x38] sm:$0xff]  ;;  %v188_v1 = vld [vmem:[%s288_s1 + $0x30] sm:$0xff] }
   0x2   :  { %99 = vmatpush.bf16.msra.mxu0 %v189_v0  ;;  %190 = vmatpush.bf16.msra.mxu1 %v189_v0 }
   0x3   :  { %8 = vsyncpa [#allocation3], 0  ;;  %v187_v2 = vld [vmem:[%s288_s1 + $0x28] sm:$0xff]  ;;  %v186_v3 = vld [vmem:[%s288_s1 + $0x20] sm:$0xff]  ;;  %s230_s10 = smov 8  }
   0x4   :  { %v185_v4 = vld [vmem:[%s288_s1 + $0x18] sm:$0xff]  ;;  %v184_v5 = vld [vmem:[%s288_s1 + $0x10] sm:$0xff]  ;;  %v183_v6 = vld [vmem:[%s288_s1 + $0x8] sm:$0xff] }
   0x5   :  { %v182_v7 = vld [vmem:[%s288_s1] sm:$0xff]  ;;  %v181_v9 = vld [vmem:[%s287_s0 + $0x8] sm:$0xff]  ;;  %s228_s1 = smov [#allocation2]  }
   0x6   :  { %100 = vmatpush.bf16.msra.mxu0 %v188_v1  ;;  %191 = vmatpush.bf16.msra.mxu1 %v188_v1  ;;  %v180_v8 = vld [vmem:[%s287_s0] sm:$0xff]  ;;  %s126_s7 = sshll.u32 %s228_s1, 4  ;;  %s128_s0 = sshll.u32 %s290_s3, 4  ;;  %s127_s7 = int_to_ptr.vmem [resolvable:$true] %s126_s7  ;;  %s129_s0 = int_to_ptr.hbm [resolvable:$true] %s128_s0 }
   0x7   :  { %v201_v10 = vld [vmem:[%s289_s2] ss:$0 sm:$0xff]  ;;  %s229_s2 = smov 128  }
   0xa   :  { %101 = vmatpush.bf16.msra.mxu0 %v187_v2  ;;  %192 = vmatpush.bf16.msra.mxu1 %v187_v2 }
   0xe   :  { %102 = vmatpush.bf16.msra.mxu0 %v186_v3  ;;  %193 = vmatpush.bf16.msra.mxu1 %v186_v3 }
  0x12   :  { %103 = vmatpush.bf16.msra.mxu0 %v185_v4  ;;  %194 = vmatpush.bf16.msra.mxu1 %v185_v4 }
  0x16   :  { %104 = vmatpush.bf16.msra.mxu0 %v184_v5  ;;  %195 = vmatpush.bf16.msra.mxu1 %v184_v5 }
  0x1a   :  { %105 = vmatpush.bf16.msra.mxu0 %v183_v6  ;;  %196 = vmatpush.bf16.msra.mxu1 %v183_v6 }
  0x1e   :  { %106 = vmatpush.bf16.msra.mxu0 %v182_v7  ;;  %197 = vmatpush.bf16.msra.mxu1 %v182_v7 }
  0x21   :  { %107 = vmatmul.bf16.vlgmr.msra.gmra.mxu0 %v180_v8  ;;  %112 = vmatmul.bf16.vlgmr.msra.gmra.mxu1 %v181_v9 }
  0x9e   :  { %v108_v11 = vpop.f32.mrf.mxu0  ;;  %v113_v12 = vpop.f32.mrf.mxu1 }
  0x9f   :  { %v109_v13 = vadd.f32 %v201_v10, %v108_v11  ;;  %v114_v14 = vadd.f32 %v201_v10, %v113_v12 }
  0xa1   :  { %118 = vst [vmem:[#allocation2] sm:$0xff] %v109_v13 }
  0xa2   :  { %120 = vst [vmem:[#allocation2 + $0x10] sm:$0xff] %v114_v14 }
  0xa6   :  { %v110_v15 = vpop.f32.mrf.mxu0  ;;  %v115_v16 = vpop.f32.mrf.mxu1 }
  0xa7   :  { %v111_v17 = vadd.f32 %v201_v10, %v110_v15  ;;  %v116_v18 = vadd.f32 %v201_v10, %v115_v16 }
  0xa9   :  { %119 = vst [vmem:[#allocation2 + $0x8] sm:$0xff] %v111_v17 }
  0xaa   :  { %121 = vst [vmem:[#allocation2 + $0x18] sm:$0xff] %v116_v18 }
  0xab   :  { %134 = dma.vmem_to_hbm [thread:$0]  %s127_s7, 512, %s129_s0, [#allocation3], %s229_s2, %s229_s2, %s230_s10  }
  0xac   :  { %226 = dma.done.wait [#allocation3], 512  }
  0xad   :  { %227 = vsyncadd [#allocation3], 4294966784 }
  0xae   :  { %139 = vsyncpa [#allocation3], 1 }

// kernel: causal_self_attention.3
= control target key start
LH: loop header
LB: loop body
LE: loop exit
PB: predicated region body
PF: predicated region fallthrough
CT: control target
= control target key end

     0   :  { %s610_s1 = inlined_call_operand.vmem [shape: bf16[128,384], index: 1, kind: input, shape index: {}]   ;;  %s611_s0 = inlined_call_operand.vmem [shape: bf16[32,128], index: 0, kind: input, shape index: {}]   ;;  %s612_s2 = inlined_call_operand.vmem [shape: f32[1,384], index: 2, kind: input, shape index: {}]   ;;  %s613_s3 = inlined_call_operand.vmem [shape: bf16[32,384], index: 3, kind: output, shape index: {}]  }
   0x1   :  { %v369_v0 = vld [vmem:[%s610_s1 + $0xa8] sm:$0xf]  ;;  %v403_v1 = vld [vmem:[%s610_s1 + $0xb0] sm:$0xf0]  ;;  %v402_v2 = vld [vmem:[%s610_s1 + $0xac] sm:$0xf] }
   0x2   :  { %v370_v3 = vor.u32 %v403_v1, %v369_v0  ;;  %v371_v4 = vld [vmem:[%s610_s1 + $0xb4] sm:$0xf0]  ;;  %v377_v5 = vld [vmem:[%s610_s1 + $0xb0] sm:$0xf]  ;;  %v404_v6 = vld [vmem:[%s610_s1 + $0xb8] sm:$0xf0] }
   0x3   :  { %v374_v7 = vor.u32 %v402_v2, %v371_v4  ;;  %v378_v8 = vor.u32 %v404_v6, %v377_v5  ;;  %v357_v9 = vld [vmem:[%s610_s1 + $0x90] sm:$0xf]  ;;  %v400_v10 = vld [vmem:[%s610_s1 + $0x98] sm:$0xf0]  ;;  %v399_v11 = vld [vmem:[%s610_s1 + $0x94] sm:$0xf] }
   0x4   :  { %198 = vmatpush.bf16.msra.mxu0 %v370_v3  ;;  %v358_v12 = vor.u32 %v400_v10, %v357_v9  ;;  %v359_v13 = vld [vmem:[%s610_s1 + $0x9c] sm:$0xf0]  ;;  %v365_v14 = vld [vmem:[%s610_s1 + $0x98] sm:$0xf]  ;;  %v401_v15 = vld [vmem:[%s610_s1 + $0xa0] sm:$0xf0]  ;;  %405 = vmatpush.bf16.msra.mxu3 %v370_v3 }
   0x5   :  { %217 = vmatpush.bf16.msra.mxu1 %v374_v7  ;;  %236 = vmatpush.bf16.msra.mxu2 %v378_v8  ;;  %v362_v16 = vor.u32 %v399_v11, %v359_v13  ;;  %v366_v17 = vor.u32 %v401_v15, %v365_v14  ;;  %v345_v18 = vld [vmem:[%s610_s1 + $0x78] sm:$0xf]  ;;  %v397_v19 = vld [vmem:[%s610_s1 + $0x80] sm:$0xf0]  ;;  %v396_v20 = vld [vmem:[%s610_s1 + $0x7c] sm:$0xf] }
   0x6   :  { %v347_v21 = vld [vmem:[%s610_s1 + $0x84] sm:$0xf0]  ;;  %v353_v22 = vld [vmem:[%s610_s1 + $0x80] sm:$0xf]  ;;  %v398_v23 = vld [vmem:[%s610_s1 + $0x88] sm:$0xf0]  ;;  %v346_v24 = vor.u32 %v397_v19, %v345_v18 }
   0x7   :  { %v350_v25 = vor.u32 %v396_v20, %v347_v21  ;;  %v354_v26 = vor.u32 %v398_v23, %v353_v22  ;;  %v333_v27 = vld [vmem:[%s610_s1 + $0x60] sm:$0xf]  ;;  %v394_v28 = vld [vmem:[%s610_s1 + $0x68] sm:$0xf0]  ;;  %v393_v29 = vld [vmem:[%s610_s1 + $0x64] sm:$0xf] }
   0x8   :  { %199 = vmatpush.bf16.msra.mxu0 %v358_v12  ;;  %406 = vmatpush.bf16.msra.mxu3 %v358_v12  ;;  %v335_v30 = vld [vmem:[%s610_s1 + $0x6c] sm:$0xf0]  ;;  %v341_v31 = vld [vmem:[%s610_s1 + $0x68] sm:$0xf]  ;;  %v395_v32 = vld [vmem:[%s610_s1 + $0x70] sm:$0xf0]  ;;  %v334_v33 = vor.u32 %v394_v28, %v333_v27 }
   0x9   :  { %218 = vmatpush.bf16.msra.mxu1 %v362_v16  ;;  %237 = vmatpush.bf16.msra.mxu2 %v366_v17  ;;  %v338_v34 = vor.u32 %v393_v29, %v335_v30  ;;  %v342_v35 = vor.u32 %v395_v32, %v341_v31  ;;  %v321_v36 = vld [vmem:[%s610_s1 + $0x48] sm:$0xf]  ;;  %v391_v37 = vld [vmem:[%s610_s1 + $0x50] sm:$0xf0]  ;;  %v390_v38 = vld [vmem:[%s610_s1 + $0x4c] sm:$0xf] }
   0xa   :  { %v323_v39 = vld [vmem:[%s610_s1 + $0x54] sm:$0xf0]  ;;  %v329_v40 = vld [vmem:[%s610_s1 + $0x50] sm:$0xf]  ;;  %v392_v41 = vld [vmem:[%s610_s1 + $0x58] sm:$0xf0]  ;;  %v322_v42 = vor.u32 %v391_v37, %v321_v36 }
   0xb   :  { %v326_v43 = vor.u32 %v390_v38, %v323_v39  ;;  %v330_v44 = vor.u32 %v392_v41, %v329_v40  ;;  %v309_v45 = vld [vmem:[%s610_s1 + $0x30] sm:$0xf]  ;;  %v388_v46 = vld [vmem:[%s610_s1 + $0x38] sm:$0xf0]  ;;  %v387_v47 = vld [vmem:[%s610_s1 + $0x34] sm:$0xf] }
   0xc   :  { %200 = vmatpush.bf16.msra.mxu0 %v346_v24  ;;  %407 = vmatpush.bf16.msra.mxu3 %v346_v24  ;;  %v311_v48 = vld [vmem:[%s610_s1 + $0x3c] sm:$0xf0]  ;;  %v317_v49 = vld [vmem:[%s610_s1 + $0x38] sm:$0xf]  ;;  %v389_v50 = vld [vmem:[%s610_s1 + $0x40] sm:$0xf0]  ;;  %v310_v51 = vor.u32 %v388_v46, %v309_v45 }
   0xd   :  { %219 = vmatpush.bf16.msra.mxu1 %v350_v25  ;;  %238 = vmatpush.bf16.msra.mxu2 %v354_v26  ;;  %v314_v52 = vor.u32 %v387_v47, %v311_v48  ;;  %v318_v53 = vor.u32 %v389_v50, %v317_v49  ;;  %v297_v54 = vld [vmem:[%s610_s1 + $0x18] sm:$0xf]  ;;  %v385_v55 = vld [vmem:[%s610_s1 + $0x20] sm:$0xf0]  ;;  %v384_v56 = vld [vmem:[%s610_s1 + $0x1c] sm:$0xf] }
   0xe   :  { %v299_v57 = vld [vmem:[%s610_s1 + $0x24] sm:$0xf0]  ;;  %v305_v58 = vld [vmem:[%s610_s1 + $0x20] sm:$0xf]  ;;  %v386_v59 = vld [vmem:[%s610_s1 + $0x28] sm:$0xf0]  ;;  %v298_v60 = vor.u32 %v385_v55, %v297_v54 }
   0xf   :  { %v302_v61 = vor.u32 %v384_v56, %v299_v57  ;;  %v306_v62 = vor.u32 %v386_v59, %v305_v58  ;;  %v285_v63 = vld [vmem:[%s610_s1] sm:$0xf]  ;;  %v382_v0 = vld [vmem:[%s610_s1 + $0x8] sm:$0xf0]  ;;  %v381_v1 = vld [vmem:[%s610_s1 + $0x4] sm:$0xf] }
  0x10   :  { %201 = vmatpush.bf16.msra.mxu0 %v334_v33  ;;  %408 = vmatpush.bf16.msra.mxu3 %v334_v33  ;;  %v287_v2 = vld [vmem:[%s610_s1 + $0xc] sm:$0xf0]  ;;  %v293_v3 = vld [vmem:[%s610_s1 + $0x8] sm:$0xf]  ;;  %v383_v4 = vld [vmem:[%s610_s1 + $0x10] sm:$0xf0]  ;;  %v286_v5 = vor.u32 %v382_v0, %v285_v63 }
  0x11   :  { %220 = vmatpush.bf16.msra.mxu1 %v338_v34  ;;  %239 = vmatpush.bf16.msra.mxu2 %v342_v35  ;;  %v290_v6 = vor.u32 %v381_v1, %v287_v2  ;;  %v294_v7 = vor.u32 %v383_v4, %v293_v3  ;;  %v379_v8 = vld [vmem:[%s611_s0] sm:$0xff]  ;;  %v380_v9 = vld [vmem:[%s611_s0 + $0x8] sm:$0xff] }
  0x12   :  { %v50_v10 = vld [vmem:[%s612_s2] sm:$0x7] }
  0x13   :  { %v52_v11 = vperm.slane %v50_v10, 0  ;;  %v53_v12 = vperm.slane %v50_v10, 1  ;;  %v54_v18 = vperm.slane %v50_v10, 2 }
  0x14   :  { %202 = vmatpush.bf16.msra.mxu0 %v322_v42  ;;  %409 = vmatpush.bf16.msra.mxu3 %v322_v42 }
  0x15   :  { %221 = vmatpush.bf16.msra.mxu1 %v326_v43  ;;  %240 = vmatpush.bf16.msra.mxu2 %v330_v44 }
  0x18   :  { %203 = vmatpush.bf16.msra.mxu0 %v310_v51  ;;  %410 = vmatpush.bf16.msra.mxu3 %v310_v51 }
  0x19   :  { %222 = vmatpush.bf16.msra.mxu1 %v314_v52  ;;  %241 = vmatpush.bf16.msra.mxu2 %v318_v53 }
  0x1c   :  { %204 = vmatpush.bf16.msra.mxu0 %v298_v60  ;;  %411 = vmatpush.bf16.msra.mxu3 %v298_v60 }
  0x1d   :  { %223 = vmatpush.bf16.msra.mxu1 %v302_v61  ;;  %242 = vmatpush.bf16.msra.mxu2 %v306_v62 }
  0x20   :  { %205 = vmatpush.bf16.msra.mxu0 %v286_v5  ;;  %412 = vmatpush.bf16.msra.mxu3 %v286_v5 }
  0x21   :  { %224 = vmatpush.bf16.msra.mxu1 %v290_v6  ;;  %243 = vmatpush.bf16.msra.mxu2 %v294_v7 }
  0x23   :  { %206 = vmatmul.bf16.vlgmr.msra.gmra.mxu0 %v379_v8  ;;  %211 = vmatmul.bf16.vlgmr.msra.gmra.mxu3 %v380_v9 }
  0x24   :  { %225 = vmatmul.bf16.vlgmr.msra.gmra.mxu1 %v379_v8  ;;  %244 = vmatmul.bf16.vlgmr.msra.gmra.mxu2 %v379_v8 }
  0x34   :  { %230 = vmatmul.bf16.gmra.mxu1 %v380_v9  ;;  %249 = vmatmul.bf16.gmra.mxu2 %v380_v9 }
  0xa0   :  { %v207_v13 = vpop.f32.mrf.mxu0 }
  0xa1   :  { %v208_v14 = vadd.f32 %v207_v13, %v52_v11  ;;  %v226_v15 = vpop.f32.mrf.mxu1 }
  0xa2   :  { %v227_v16 = vadd.f32 %v226_v15, %v53_v12 }
  0xa4   :  { %v255_v17 = vpack.c.bf16 %v227_v16, %v208_v14 }
  0xa6   :  { %263 = vst [vmem:[%s613_s3] sm:$0xff] %v255_v17  ;;  %v212_v27 = vpop.f32.mrf.mxu3 }
  0xa7   :  { %v245_v19 = vpop.f32.mrf.mxu2  ;;  %v213_v29 = vadd.f32 %v212_v27, %v52_v11 }
  0xa8   :  { %v246_v20 = vadd.f32 %v245_v19, %v54_v18  ;;  %v209_v21 = vpop.f32.mrf.mxu0 }
  0xa9   :  { %v210_v22 = vadd.f32 %v209_v21, %v52_v11  ;;  %v228_v23 = vpop.f32.mrf.mxu1 }
  0xaa   :  { %v256_v24 = vpack.c.bf16 %v246_v20, %v246_v20  ;;  %v229_v25 = vadd.f32 %v228_v23, %v53_v12 }
  0xac   :  { %264 = vst [vmem:[%s613_s3 + $0x8] sm:$0xf] %v256_v24  ;;  %v257_v26 = vpack.c.bf16 %v229_v25, %v210_v22 }
  0xae   :  { %265 = vst [vmem:[%s613_s3 + $0xc] sm:$0xff] %v257_v26  ;;  %v214_v35 = vpop.f32.mrf.mxu3 }
  0xaf   :  { %v247_v28 = vpop.f32.mrf.mxu2  ;;  %v215_v39 = vadd.f32 %v214_v35, %v52_v11 }
  0xb0   :  { %v248_v30 = vadd.f32 %v247_v28, %v54_v18 }
  0xb1   :  { %v231_v31 = vpop.f32.mrf.mxu1 }
  0xb2   :  { %v258_v32 = vpack.c.bf16 %v248_v30, %v248_v30  ;;  %v232_v33 = vadd.f32 %v231_v31, %v53_v12 }
  0xb4   :  { %266 = vst [vmem:[%s613_s3 + $0x14] sm:$0xf] %v258_v32  ;;  %v259_v34 = vpack.c.bf16 %v232_v33, %v213_v29 }
  0xb6   :  { %267 = vst [vmem:[%s613_s3 + $0x18] sm:$0xff] %v259_v34 }
  0xb7   :  { %v250_v36 = vpop.f32.mrf.mxu2 }
  0xb8   :  { %v251_v37 = vadd.f32 %v250_v36, %v54_v18 }
  0xb9   :  { %v233_v38 = vpop.f32.mrf.mxu1 }
  0xba   :  { %v260_v40 = vpack.c.bf16 %v251_v37, %v251_v37  ;;  %v234_v41 = vadd.f32 %v233_v38, %v53_v12 }
  0xbc   :  { %268 = vst [vmem:[%s613_s3 + $0x20] sm:$0xf] %v260_v40  ;;  %v261_v42 = vpack.c.bf16 %v234_v41, %v215_v39 }
  0xbe   :  { %269 = vst [vmem:[%s613_s3 + $0x24] sm:$0xff] %v261_v42 }
  0xbf   :  { %v252_v43 = vpop.f32.mrf.mxu2 }
  0xc0   :  { %v253_v44 = vadd.f32 %v252_v43, %v54_v18 }
  0xc2   :  { %v262_v45 = vpack.c.bf16 %v253_v44, %v253_v44 }
  0xc4   :  { %270 = vst [vmem:[%s613_s3 + $0x2c] sm:$0xf] %v262_v45 }

// kernel: causal_self_attention.4
= control target key start
LH: loop header
LB: loop body
LE: loop exit
PB: predicated region body
PF: predicated region fallthrough
CT: control target
= control target key end

     0   :  { %s728_s12 = smov 0   ;;  %s730_s13 = smov 0   ;;  %s792_s0 = inlined_call_operand.vmem [shape: bf16[8,16,32], index: 0, kind: input, shape index: {}]   ;;  %s793_s1 = inlined_call_operand.vmem [shape: bf16[8,16,32], index: 1, kind: input, shape index: {}]   ;;  %s794_s2 = inlined_call_operand.vmem [shape: bf16[8,16,32], index: 2, kind: input, shape index: {}]   ;;  %s795_s3 = inlined_call_operand.vmem [shape: bf16[8,16,32], index: 3, kind: output, shape index: {}]  }
   0x1   :  { %s732_s14 = smov 0  }
   0x2 LB: > { %s32_s15 = sadd.s32 1, %s699_s13  ;;  %p607_p0 = scmp.ge.s32.totalorder %s703_s14, 1  ;;  %s703_s14 = sphi %s732_s14, %s13_s14   ;;  %s699_s13 = sphi %s730_s13, %s797_s13   ;;  %s695_s12 = sphi %s728_s12, %s796_s12  }
   0x3   : > { %p34_p1 = scmp.ge.s32.totalorder %s32_s15, 8  ;;  %p199_p2 = scmp.lt.s32.totalorder %s703_s14, 9 }
   0x5   : > { %s799_s15 = smov (%p34_p1, %s32_s15), 0  ;;  %p200_p3 = pnand %p607_p0, %p199_p2 }
   0x6   : > { %p250_p4 = scmp.lt.s32.totalorder (!%p200_p3), %s695_s12, 7 }
   0x7   : > { %203 = sbr.rel (%p200_p3) target bundleno = 658 (0x292), region = 32 }
   0xc   : > { %vm299_vm0 = vcmask 261120   ;;  %v705_v0 = vmov 0.0   ;;  %s801_s12 = smov (!%p250_p4, %s695_s12), 7  ;;  %vm294_vm1 = vcmask 7168   ;;  %v706_v4 = vmov -1e+30  }
   0xd   : > { %300 = vst.msk [vmem:[#allocation4] sm:$0xff] %vm299_vm0, %v705_v0  ;;  %s748_s16 = sshll.u32 %s801_s12, 3  ;;  %v342_v5 = vlaneseq  ;;  %vm359_vm3 = vcmask 130048   ;;  %v707_v15 = vmov 0   ;;  %vm474_vm5 = vcmask 257024  }
   0xe   : > { %301 = vst.msk [vmem:[#allocation4 + $0x8] sm:$0xff] %vm299_vm0, %v705_v0  ;;  %s267_s19 = scalar_lea.vmem %s793_s1, %s748_s16  ;;  %s257_s22 = scalar_lea.vmem %s792_s0, %s748_s16  ;;  %666 = vset.pattern.permute.xlu1 %v707_v15  ;;  %667 = vset.pattern.permute.xlu0 %v707_v15 }
   0xf   : > { %v637_v1 = vld [vmem:[%s267_s19] sm:$0xff]  ;;  %295 = vst.msk [vmem:[#allocation2] sm:$0xff] %vm294_vm1, %v706_v4  ;;  %v343_v6 = vshrl.u32 %v342_v5, 7  ;;  %v350_v7 = vand.u32 127, %v342_v5  ;;  %668 = vset.pattern.permute.xlu2 %v707_v15  ;;  %s277_s25 = scalar_lea.vmem %s794_s2, %s748_s16  ;;  %s287_s28 = scalar_lea.vmem %s795_s3, %s748_s16 }
  0x10   : > { %v325_v2 = vsel %vm299_vm0, %v637_v1, 0  ;;  %v636_v3 = vld [vmem:[%s257_s22] sm:$0xff]  ;;  %296 = vst.msk [vmem:[#allocation2 + $0x8] sm:$0xff] %vm294_vm1, %v706_v4 }
  0x11   : > { %334 = vmatpush.bf16.xpose.msra.mxu0 %v325_v2  ;;  %297 = vst.msk [vmem:[#allocation3] sm:$0xff] %vm294_vm1, %v705_v0  ;;  %vm353_vm2 = vcmp.le.s32.totalorder %v350_v7, %v343_v6  ;;  %v344_v11 = vadd.s32 8, %v343_v6  ;;  %v638_v28 = vld [vmem:[%s277_s25] sm:$0xff] }
  0x12   : > { %298 = vst.msk [vmem:[#allocation3 + $0x8] sm:$0xff] %vm294_vm1, %v705_v0  ;;  %438 = vmatpush.bf16.msra.mxu1 %v638_v28 }
  0x13   : > { %vm354_vm4 = vcmp.le.s32.totalorder %v350_v7, %v344_v11 }
  0x14   : > { %v405_v49 = vld [vmem:[#allocation4] sm:$0xff] }
  0x15   : > { %v406_v56 = vld [vmem:[#allocation4 + $0x8] sm:$0xff] }
  0x16   : > { %v357_v16 = vld [vmem:[#allocation2] sm:$0xff] }
  0x17   : > { %v358_v21 = vld [vmem:[#allocation2 + $0x8] sm:$0xff] }
  0x18   : > { %624 = vmatmul.msk.bf16.vlgmr.msra.gmra.mxu0 %vm299_vm0, %v636_v3  ;;  %v390_v40 = vld [vmem:[#allocation3] sm:$0xff] }
  0x19   : > { %v391_v44 = vld [vmem:[#allocation3 + $0x8] sm:$0xff] }
  0x95   : > { %v336_v8 = vpop.f32.mrf.mxu0 }
  0x96   : > { %v355_v9 = vsel %vm353_vm2, %v336_v8, -1e+30 }
  0x97   : > { %v360_v10 = vsel %vm359_vm3, %v355_v9, -inf }
  0x98   : > { %361 = vmax.xlane.f32.xlu0 %v360_v10 }
  0x9d   : > { %v338_v12 = vpop.f32.mrf.mxu0 }
  0x9e   : > { %v356_v13 = vsel %vm354_vm4, %v338_v12, -1e+30 }
  0x9f   : > { %v363_v14 = vsel %vm359_vm3, %v356_v13, -inf }
  0xa0   : > { %364 = vmax.xlane.f32.xlu0 %v363_v14 }
 0x10b   : > { %v362_v17 = vpop.xlane.xlu0 %361 }
 0x10c   : > { %v366_v18 = vmax.f32 %v357_v16, %v362_v17 }
 0x10e   : > { %v368_v19 = vsub.f32 %v357_v16, %v366_v18  ;;  %449 = vst.msk [vmem:[#allocation2] sm:$0xff] %vm294_vm1, %v366_v18  ;;  %376 = vperm.xlu1 %666, %v366_v18  }
 0x110   : > { %v370_v20 = vmul.f32 1.442695, %v368_v19 }
 0x112   : > { %669 = vpow2.f32 %v370_v20 }
 0x113   : > { %v365_v22 = vpop.xlane.xlu0 %364 }
 0x114   : > { %v367_v23 = vmax.f32 %v358_v21, %v365_v22 }
 0x116   : > { %v369_v24 = vsub.f32 %v358_v21, %v367_v23  ;;  %450 = vst.msk [vmem:[#allocation2 + $0x8] sm:$0xff] %vm294_vm1, %v367_v23  ;;  %381 = vperm.xlu1 %666, %v367_v23  }
 0x118   : > { %v670_v25 = vpop.eup %669  ;;  %v372_v26 = vmul.f32 1.442695, %v369_v24 }
 0x119   : > { %409 = vperm.xlu0 %667, %v670_v25   ;;  %v392_v41 = vmul.f32 %v670_v25, %v390_v40 }
 0x11a   : > { %671 = vpow2.f32 %v372_v26 }
 0x120   : > { %v672_v27 = vpop.eup %671 }
 0x121   : > { %414 = vperm.xlu1 %666, %v672_v27   ;;  %v393_v45 = vmul.f32 %v672_v27, %v391_v44 }
 0x180   : > { %v377_v29 = vpop.permute.xlu1 %376 }
 0x181   : > { %v384_v30 = vsub.f32 %v355_v9, %v377_v29 }
 0x183   : > { %v386_v31 = vmul.f32 1.442695, %v384_v30 }
 0x185   : > { %673 = vpow2.f32 %v386_v31 }
 0x188   : > { %v382_v32 = vpop.permute.xlu1 %381 }
 0x189   : > { %v385_v33 = vsub.f32 %v356_v13, %v382_v32 }
 0x18b   : > { %v674_v34 = vpop.eup %673  ;;  %v388_v35 = vmul.f32 1.442695, %v385_v33  ;;  %v410_v50 = vpop.permute.xlu0 %409 }
 0x18c   : > { %v394_v36 = vsel %vm359_vm3, %v674_v34, 0.0  ;;  %v417_v52 = vmul.f32 %v410_v50, %v405_v49 }
 0x18d   : > { %675 = vpow2.f32 %v388_v35  ;;  %395 = vadd.xlane.f32.xlu2 %v394_v36 }
 0x193   : > { %v676_v37 = vpop.eup %675  ;;  %v415_v57 = vpop.permute.xlu1 %414 }
 0x194   : > { %v397_v38 = vsel %vm359_vm3, %v676_v37, 0.0  ;;  %v419_v39 = vpack.c.bf16 %v676_v37, %v674_v34  ;;  %v418_v59 = vmul.f32 %v415_v57, %v406_v56 }
 0x195   : > { %398 = vadd.xlane.f32.xlu2 %v397_v38 }
 0x196   : > { %629 = vmatmul.msk.bf16.vlgmr.msra.gmra.mxu1 %vm359_vm3, %v419_v39 }
 0x200   : > { %v396_v42 = vpop.xlane.xlu2 %395 }
 0x201   : > { %v400_v43 = vadd.f32 %v396_v42, %v392_v41 }
 0x203   : > { %403 = vst.msk [vmem:[#allocation3] sm:$0xff] %vm294_vm1, %v400_v43 }
 0x208   : > { %v399_v46 = vpop.xlane.xlu2 %398 }
 0x209   : > { %v401_v47 = vadd.f32 %v399_v46, %v393_v45 }
 0x20a   : > { %v454_v48 = vld [vmem:[#allocation3] sm:$0xff] }
 0x20b   : > { %404 = vst.msk [vmem:[#allocation3 + $0x8] sm:$0xff] %vm294_vm1, %v401_v47  ;;  %677 = vrcp.f32 %v454_v48 }
 0x211   : > { %v678_v51 = vpop.eup %677 }
 0x212   : > { %462 = vperm.xlu2 %668, %v678_v51   ;;  %v455_v53 = vld [vmem:[#allocation3 + $0x8] sm:$0xff] }
 0x213   : > { %v440_v54 = vpop.f32.mrf.mxu1  ;;  %679 = vrcp.f32 %v455_v53 }
 0x214   : > { %v445_v55 = vadd.f32 %v440_v54, %v417_v52 }
 0x216   : > { %447 = vst.msk [vmem:[#allocation4] sm:$0xff] %vm299_vm0, %v445_v55 }
 0x219   : > { %v680_v58 = vpop.eup %679 }
 0x21a   : > { %467 = vperm.xlu1 %666, %v680_v58  }
 0x21b   : > { %v442_v60 = vpop.f32.mrf.mxu1 }
 0x21c   : > { %v446_v61 = vadd.f32 %v442_v60, %v418_v59 }
 0x21d   : > { %v458_v63 = vld [vmem:[#allocation4] sm:$0xff] }
 0x21e   : > { %448 = vst.msk [vmem:[#allocation4 + $0x8] sm:$0xff] %vm299_vm0, %v446_v61 }
 0x225   : > { %v459_v2 = vld [vmem:[#allocation4 + $0x8] sm:$0xff] }
 0x26c   : > { %v463_v62 = vpop.permute.xlu2 %462 }
 0x26d   : > { %v470_v0 = vmul.f32 %v463_v62, %v458_v63 }
 0x26f   : > { %v472_v1 = vpack.c.bf16 %v470_v0, %v470_v0 }
 0x271   : > { %475 = vst.msk [vmem:[%s287_s28] sm:$0xf] %vm474_vm5, %v472_v1 }
 0x28c   : > { %v468_v3 = vpop.permute.xlu1 %467 }
 0x28d   : > { %v471_v4 = vmul.f32 %v468_v3, %v459_v2 }
 0x28f   : > { %v473_v5 = vpack.c.bf16 %v471_v4, %v471_v4 }
 0x291   : > { %476 = vst.msk [vmem:[%s287_s28 + $0x4] sm:$0xf] %vm474_vm5, %v473_v5 }
 0x292 PF: > { %s13_s14 = sadd.s32 1, %s703_s14   ;;  %s796_s12 = smov %s699_s13 }
 0x293   : > { %p10_p5 = scmp.ge.s32.totalorder %s13_s14, 10   ;;  %s797_s13 = smov %s799_s15 }
 0x295   :  { %12 = sbr.rel (!%p10_p5) target bundleno = 2 (0x2), region = 80 }

</bundles_post_ra>
